<compile_context>
chip_gen: v7x
topology: tpu7x:2x2x1
jax: 0.10.0
libtpu: 0.0.40
codegen_flags: <defaults>
</compile_context>

<pallas_src>
import jax
import jax.numpy as jnp
from jax.experimental import pallas as pl
from jax.experimental.pallas import tpu as pltpu

LANE = 128  # lane width of a vreg / MXU tile edge


def _cdiv(a, b):
    return -(-a // b)


def _round_up(x, m):
    return ((x + m - 1) // m) * m


def _pad_to(a, shape):
    return jnp.pad(a, [(0, t - s) for s, t in zip(a.shape, shape)])


# ----------------------------------------------------------------------------
# Kernel
# ----------------------------------------------------------------------------
def actor_kernel(x_ref, w1_ref, b1_ref, w2_ref, b2_ref, w3_ref, b3_ref, o_ref):
    # fc1 + relu: bf16 operands -> f32 MXU accumulate, f32 bias/relu epilogue,
    # then immediately re-pack to bf16 so the live intermediate is half-width.
    x = x_ref[...].astype(jnp.bfloat16)
    h1 = jnp.dot(x, w1_ref[...], preferred_element_type=jnp.float32)
    h1 = jnp.maximum(h1 + b1_ref[...], 0.0).astype(jnp.bfloat16)
    # fc2 + relu
    h2 = jnp.dot(h1, w2_ref[...], preferred_element_type=jnp.float32)
    h2 = jnp.maximum(h2 + b2_ref[...], 0.0).astype(jnp.bfloat16)
    # mu + tanh (tanh runs on the EUP, f32)
    mu = jnp.dot(h2, w3_ref[...], preferred_element_type=jnp.float32)
    o_ref[...] = jnp.tanh(mu + b3_ref[...]).astype(o_ref.dtype)


# ----------------------------------------------------------------------------
# Parameter init (nn.Linear-style) + one-time padding/casting for the kernel
# ----------------------------------------------------------------------------
def init_params(key, input_dims, fc1_dims, fc2_dims, n_actions):
    """Uniform +/- 1/sqrt(fan_in); weights stored transposed [in, out]."""
    ks = jax.random.split(key, 6)

    def linear(kw, kb, fan_in, fan_out):
        bound = 1.0 / jnp.sqrt(fan_in)
        w = jax.random.uniform(kw, (fan_in, fan_out), jnp.float32, -bound, bound)
        b = jax.random.uniform(kb, (1, fan_out), jnp.float32, -bound, bound)
        return w, b

    w1, b1 = linear(ks[0], ks[1], input_dims, fc1_dims)
    w2, b2 = linear(ks[2], ks[3], fc1_dims, fc2_dims)
    w3, b3 = linear(ks[4], ks[5], fc2_dims, n_actions)
    return {"w1": w1, "b1": b1, "w2": w2, "b2": b2, "w3": w3, "b3": b3}


def prepare_params(params):
    """Zero-pad the hidden/output feature dims to multiples of 128 lanes and
    cast weight matrices to bf16 (native MXU path).  W1's *input* dim stays
    unpadded since x is fed to the kernel unpadded; zero-padded weight
    rows/cols are all that correctness requires.  Biases stay f32."""
    d_in, fc1 = params["w1"].shape
    fc2 = params["w2"].shape[1]
    n_act = params["w3"].shape[1]
    h1p = _round_up(fc1, LANE)
    h2p = _round_up(fc2, LANE)
    ap = _round_up(n_act, LANE)
    return {
        "w1": _pad_to(params["w1"], (d_in, h1p)).astype(jnp.bfloat16),
        "b1": _pad_to(params["b1"], (1, h1p)),
        "w2": _pad_to(params["w2"], (h1p, h2p)).astype(jnp.bfloat16),
        "b2": _pad_to(params["b2"], (1, h2p)),
        "w3": _pad_to(params["w3"], (h2p, ap)).astype(jnp.bfloat16),
        "b3": _pad_to(params["b3"], (1, ap)),
    }


# ----------------------------------------------------------------------------
# Batch-tile selection
# ----------------------------------------------------------------------------
def _select_batch_tile(B, tb_max=2048):
    """Pick (tile_rows, padded_batch).

    * tiles capped at tb_max (2048 amortizes the ~0.35 us per-step overhead
      on all generations without over-tiling v5e),
    * >= 2 grid steps for big batches so the "parallel" axis can be split
      across the two v7x TensorCores,
    * tile sized to cdiv(B, steps) (rounded to 16 rows for 16-bit sublane
      packing) so awkward batch sizes don't pad up to a full extra tile.
    """
    B = max(int(B), 1)
    steps = _cdiv(B, tb_max)
    if steps == 1 and B >= 1024:
        steps = 2  # give the second v7x TensorCore work
    tb = min(_round_up(_cdiv(B, steps), 16), _round_up(tb_max, 16))
    bp = _round_up(B, tb)
    return tb, bp


# ----------------------------------------------------------------------------
# Wrapper
# ----------------------------------------------------------------------------
def actor_forward(x, prep, n_actions, tb_max=2048, out_dtype=jnp.float32):
    """x: [B, input_dims] float32; prep: padded/bf16 params from prepare_params."""
    w1, b1 = prep["w1"], prep["b1"]
    w2, b2 = prep["w2"], prep["b2"]
    w3, b3 = prep["w3"], prep["b3"]

    B, d_in = x.shape
    assert w1.shape[0] == d_in, "x feature dim must match W1 input dim"
    h1p = w1.shape[1]
    h2p, ap = w3.shape

    tb, bp = _select_batch_tile(B, tb_max)

    # Only pad batch rows when needed (cheap: d_in f32 columns).  No wrapper
    # side 128-lane x materialization; the cast to bf16 happens in-kernel.
    x_p = x if bp == B else jnp.pad(x, ((0, bp - B), (0, 0)))

    # Weights/biases: constant index_map -> copied into VMEM once, resident
    # across all grid iterations.
    resident = lambda a: pl.BlockSpec(a.shape, lambda i: (0, 0))

    out_itemsize = jnp.dtype(out_dtype).itemsize
    cost = pl.CostEstimate(
        flops=2 * bp * (d_in * h1p + h1p * h2p + h2p * ap),
        transcendentals=bp * ap,
        bytes_accessed=(
            int(x_p.size) * 4
            + sum(int(a.size) * a.dtype.itemsize for a in (w1, b1, w2, b2, w3, b3))
            + bp * ap * out_itemsize
        ),
    )

    out_p = pl.pallas_call(
        actor_kernel,
        out_shape=jax.ShapeDtypeStruct((bp, ap), out_dtype),
        grid=(bp // tb,),
        in_specs=[
            pl.BlockSpec((tb, d_in), lambda i: (i, 0)),  # x tile (pipelined)
            resident(w1), resident(b1),                  # weights/biases resident
            resident(w2), resident(b2),
            resident(w3), resident(b3),
        ],
        out_specs=pl.BlockSpec((tb, ap), lambda i: (i, 0)),  # lane-dense store
        compiler_params=pltpu.CompilerParams(
            dimension_semantics=("parallel",),           # 2-TC split on v7x
            vmem_limit_bytes=32 * 1024 * 1024,           # few MiB used; safe on all gens
        ),
        cost_estimate=cost,
    )(x_p, w1, b1, w2, b2, w3, b3)

    return out_p[:B, :n_actions]


# ----------------------------------------------------------------------------
# Demo / correctness check
# ----------------------------------------------------------------------------
if __name__ == "__main__":
    batch = 2
    input_dims = 8
    fc1_dims = 32
    fc2_dims = 32
    n_actions = 4

    key = jax.random.PRNGKey(0)
    k_x, k_p = jax.random.split(key)

    x = jax.random.normal(k_x, (batch, input_dims), dtype=jnp.float32)
    params = init_params(k_p, input_dims, fc1_dims, fc2_dims, n_actions)
    prep = prepare_params(params)

    out = actor_forward(x, prep, n_actions)
    out = jax.block_until_ready(out)
    assert out.shape == (batch, n_actions)
    assert out.dtype == jnp.float32

    # Reference 1: mirrors the kernel's bf16-operand / f32-accumulate matmuls.
    bf = jnp.bfloat16
    h1 = jnp.maximum(
        jnp.dot(x.astype(bf), params["w1"].astype(bf),
                preferred_element_type=jnp.float32) + params["b1"], 0.0)
    h2 = jnp.maximum(
        jnp.dot(h1.astype(bf), params["w2"].astype(bf),
                preferred_element_type=jnp.float32) + params["b2"], 0.0)
    ref_bf16 = jnp.tanh(
        jnp.dot(h2.astype(bf), params["w3"].astype(bf),
                preferred_element_type=jnp.float32) + params["b3"])
    assert jnp.allclose(out, ref_bf16, atol=1e-4), "mismatch vs bf16 reference"

    # Reference 2: pure f32 forward (module semantics); bf16-operand tolerance.
    ref_f32 = jnp.tanh(
        jnp.maximum(
            jnp.maximum(x @ params["w1"] + params["b1"], 0.0) @ params["w2"]
            + params["b2"], 0.0,
        ) @ params["w3"] + params["b3"]
    )
    assert jnp.allclose(out, ref_f32, atol=3e-2), "mismatch vs f32 reference"

    # TODO(synk): optimizer / checkpoint save-load from the PyTorch module are
    # host-side training utilities with no kernel equivalent.

    print("KERNEL_OK")
</pallas_src>

<mosaic_0001>
module attributes {stable_mosaic.version = 11 : i64} {
  func.func @actor_kernel(%arg0: i32, %arg1: memref<16x8xf32, #tpu.memory_space<vmem>>, %arg2: memref<8x128xbf16, #tpu.memory_space<vmem>>, %arg3: memref<1x128xf32, #tpu.memory_space<vmem>>, %arg4: memref<128x128xbf16, #tpu.memory_space<vmem>>, %arg5: memref<1x128xf32, #tpu.memory_space<vmem>>, %arg6: memref<128x128xbf16, #tpu.memory_space<vmem>>, %arg7: memref<1x128xf32, #tpu.memory_space<vmem>>, %arg8: memref<16x128xf32, #tpu.memory_space<vmem>>) attributes {dimension_semantics = [#tpu.dimension_semantics<parallel>], iteration_bounds = array<i64: 1>, scalar_prefetch = 0 : i64, scratch_operands = 0 : i64, tpu.core_type = #tpu.core_type<tc>, window_params = [{transform_indices = @transform_0, window_bounds = array<i64: 16, 8>}, {pipeline_mode = #tpu.pipeline_mode<synchronous>, transform_indices = @transform_1, window_bounds = array<i64: 8, 128>}, {pipeline_mode = #tpu.pipeline_mode<synchronous>, transform_indices = @transform_2, window_bounds = array<i64: 1, 128>}, {pipeline_mode = #tpu.pipeline_mode<synchronous>, transform_indices = @transform_3, window_bounds = array<i64: 128, 128>}, {pipeline_mode = #tpu.pipeline_mode<synchronous>, transform_indices = @transform_4, window_bounds = array<i64: 1, 128>}, {pipeline_mode = #tpu.pipeline_mode<synchronous>, transform_indices = @transform_5, window_bounds = array<i64: 128, 128>}, {pipeline_mode = #tpu.pipeline_mode<synchronous>, transform_indices = @transform_6, window_bounds = array<i64: 1, 128>}, {transform_indices = @transform_7, window_bounds = array<i64: 16, 128>}]} {
    %c0 = arith.constant 0 : index
    %c0_0 = arith.constant 0 : index
    %0 = vector.load %arg1[%c0, %c0_0] : memref<16x8xf32, #tpu.memory_space<vmem>>, vector<16x8xf32>
    %1 = arith.truncf %0 : vector<16x8xf32> to vector<16x8xbf16>
    %c0_1 = arith.constant 0 : index
    %c0_2 = arith.constant 0 : index
    %2 = vector.load %arg2[%c0_1, %c0_2] : memref<8x128xbf16, #tpu.memory_space<vmem>>, vector<8x128xbf16>
    %cst = arith.constant dense<0.000000e+00> : vector<16x128xf32>
    %3 = tpu.matmul %1, %2, %cst {dimension_numbers = #tpu.dot_dimension_numbers<[1], [0], [0], [1], [0, 0, 1, 1], [], []>} : vector<16x8xbf16>, vector<8x128xbf16>, vector<16x128xf32> -> vector<16x128xf32>
    %c0_3 = arith.constant 0 : index
    %c0_4 = arith.constant 0 : index
    %4 = vector.load %arg3[%c0_3, %c0_4] : memref<1x128xf32, #tpu.memory_space<vmem>>, vector<1x128xf32>
    %5 = vector.broadcast %4 : vector<1x128xf32> to vector<16x128xf32>
    %6 = arith.addf %3, %5 : vector<16x128xf32>
    %cst_5 = arith.constant 0.000000e+00 : f32
    %7 = vector.broadcast %cst_5 : f32 to vector<16x128xf32>
    %8 = arith.maximumf %6, %7 : vector<16x128xf32>
    %9 = arith.truncf %8 : vector<16x128xf32> to vector<16x128xbf16>
    %c0_6 = arith.constant 0 : index
    %c0_7 = arith.constant 0 : index
    %10 = vector.load %arg4[%c0_6, %c0_7] : memref<128x128xbf16, #tpu.memory_space<vmem>>, vector<128x128xbf16>
    %cst_8 = arith.constant dense<0.000000e+00> : vector<16x128xf32>
    %11 = tpu.matmul %9, %10, %cst_8 {dimension_numbers = #tpu.dot_dimension_numbers<[1], [0], [0], [1], [0, 0, 1, 1], [], []>} : vector<16x128xbf16>, vector<128x128xbf16>, vector<16x128xf32> -> vector<16x128xf32>
    %c0_9 = arith.constant 0 : index
    %c0_10 = arith.constant 0 : index
    %12 = vector.load %arg5[%c0_9, %c0_10] : memref<1x128xf32, #tpu.memory_space<vmem>>, vector<1x128xf32>
    %13 = vector.broadcast %12 : vector<1x128xf32> to vector<16x128xf32>
    %14 = arith.addf %11, %13 : vector<16x128xf32>
    %cst_11 = arith.constant 0.000000e+00 : f32
    %15 = vector.broadcast %cst_11 : f32 to vector<16x128xf32>
    %16 = arith.maximumf %14, %15 : vector<16x128xf32>
    %17 = arith.truncf %16 : vector<16x128xf32> to vector<16x128xbf16>
    %c0_12 = arith.constant 0 : index
    %c0_13 = arith.constant 0 : index
    %18 = vector.load %arg6[%c0_12, %c0_13] : memref<128x128xbf16, #tpu.memory_space<vmem>>, vector<128x128xbf16>
    %cst_14 = arith.constant dense<0.000000e+00> : vector<16x128xf32>
    %19 = tpu.matmul %17, %18, %cst_14 {dimension_numbers = #tpu.dot_dimension_numbers<[1], [0], [0], [1], [0, 0, 1, 1], [], []>} : vector<16x128xbf16>, vector<128x128xbf16>, vector<16x128xf32> -> vector<16x128xf32>
    %c0_15 = arith.constant 0 : index
    %c0_16 = arith.constant 0 : index
    %20 = vector.load %arg7[%c0_15, %c0_16] : memref<1x128xf32, #tpu.memory_space<vmem>>, vector<1x128xf32>
    %21 = vector.broadcast %20 : vector<1x128xf32> to vector<16x128xf32>
    %22 = arith.addf %19, %21 : vector<16x128xf32>
    %23 = math.tanh %22 : vector<16x128xf32>
    %c0_17 = arith.constant 0 : index
    %c0_18 = arith.constant 0 : index
    %24 = vector.load %arg8[%c0_17, %c0_18] : memref<16x128xf32, #tpu.memory_space<vmem>>, vector<16x128xf32>
    tpu.vector_store %arg8[%c0_17, %c0_18], %23 {strides = array<i32>} : memref<16x128xf32, #tpu.memory_space<vmem>>, vector<16x128xf32>,
    return
  }
  func.func @transform_0(%arg0: i32) -> (i32, i32) {
    %c0_i32 = arith.constant 0 : i32
    %c0_i32_0 = arith.constant 0 : i32
    return %arg0, %c0_i32 : i32, i32
  }
  func.func @transform_1(%arg0: i32) -> (i32, i32) {
    %c0_i32 = arith.constant 0 : i32
    %c0_i32_0 = arith.constant 0 : i32
    %c0_i32_1 = arith.constant 0 : i32
    return %c0_i32, %c0_i32_0 : i32, i32
  }
  func.func @transform_2(%arg0: i32) -> (i32, i32) {
    %c0_i32 = arith.constant 0 : i32
    %c0_i32_0 = arith.constant 0 : i32
    %c0_i32_1 = arith.constant 0 : i32
    return %c0_i32, %c0_i32_0 : i32, i32
  }
  func.func @transform_3(%arg0: i32) -> (i32, i32) {
    %c0_i32 = arith.constant 0 : i32
    %c0_i32_0 = arith.constant 0 : i32
    %c0_i32_1 = arith.constant 0 : i32
    return %c0_i32, %c0_i32_0 : i32, i32
  }
  func.func @transform_4(%arg0: i32) -> (i32, i32) {
    %c0_i32 = arith.constant 0 : i32
    %c0_i32_0 = arith.constant 0 : i32
    %c0_i32_1 = arith.constant 0 : i32
    return %c0_i32, %c0_i32_0 : i32, i32
  }
  func.func @transform_5(%arg0: i32) -> (i32, i32) {
    %c0_i32 = arith.constant 0 : i32
    %c0_i32_0 = arith.constant 0 : i32
    %c0_i32_1 = arith.constant 0 : i32
    return %c0_i32, %c0_i32_0 : i32, i32
  }
  func.func @transform_6(%arg0: i32) -> (i32, i32) {
    %c0_i32 = arith.constant 0 : i32
    %c0_i32_0 = arith.constant 0 : i32
    %c0_i32_1 = arith.constant 0 : i32
    return %c0_i32, %c0_i32_0 : i32, i32
  }
  func.func @transform_7(%arg0: i32) -> (i32, i32) {
    %c0_i32 = arith.constant 0 : i32
    %c0_i32_0 = arith.constant 0 : i32
    return %arg0, %c0_i32 : i32, i32
  }
}

</mosaic_0001>

<bundles_post_ra>
// kernel: tpu_custom_call.1
= control target key start
LH: loop header
LB: loop body
LE: loop exit
PB: predicated region body
PF: predicated region fallthrough
CT: control target
= control target key end

     0   :  { %12 = vsyncpa [#allocation3], 0  ;;  %s681_s0 = inlined_call_operand.vmem [shape: f32[16,8], index: 0, kind: input, shape index: {}]   ;;  %s682_s1 = inlined_call_operand.vmem [shape: bf16[8,128], index: 1, kind: input, shape index: {}]   ;;  %s683_s2 = inlined_call_operand.vmem [shape: f32[1,128], index: 2, kind: input, shape index: {}]   ;;  %s684_s3 = inlined_call_operand.hbm [shape: bf16[128,128], index: 3, kind: input, shape index: {}]   ;;  %s685_s4 = inlined_call_operand.vmem [shape: f32[1,128], index: 4, kind: input, shape index: {}]   ;;  %s686_s5 = inlined_call_operand.hbm [shape: bf16[128,128], index: 5, kind: input, shape index: {}]   ;;  %s687_s6 = inlined_call_operand.vmem [shape: f32[1,128], index: 6, kind: input, shape index: {}]   ;;  %s688_s7 = inlined_call_operand.hbm [shape: f32[16,128], index: 7, kind: output, shape index: {}]  }
   0x1   :  { %13 = vsyncpa [#allocation6], 0 }
   0x2   :  { %14 = vsyncpa [#allocation4], 0  ;;  %s555_s24 = smov [#allocation2]   ;;  %s483_s28 = scalar_lea.hbm %s684_s3, 1024 }
   0x3   :  { %s26_s25 = sshll.u32 %s555_s24, 4  ;;  %p484_p0 = scmp.ne.s32.totalorder %s684_s3, %s483_s28  ;;  %s27_s25 = int_to_ptr.vmem [resolvable:$true] %s26_s25 }
   0x4   :  { %p487_p1 = scmp.lt.u32.totalorder %s483_s28, %s684_s3 }
   0x6   :  { %p489_p2 = pnand %p487_p1, %p484_p0 }
   0x8   :  { %492 = shalt.err (!%p489_p2)
}
   0x9   :  { %s493_s10 = scalar_lea.vmem %s27_s25, 1024  ;;  %p498_p4 = scmp.lt.s32.totalorder %s27_s25, %s27_s25 }
   0xa   :  { %p494_p3 = scmp.ne.s32.totalorder %s27_s25, %s493_s10  ;;  %p499_p5 = scmp.lt.s32.totalorder %s493_s10, %s493_s10 }
   0xc   :  { %p500_p6 = por %p499_p5, %p498_p4 }
   0xe   :  { %p501_p7 = pnand %p500_p6, %p494_p3 }
  0x10   :  { %504 = shalt.err (!%p501_p7)
}
  0x11   :  { %s556_s11 = smov 64   ;;  %s557_s12 = smov 4  }
  0x12   :  { %32 = dma.hbm_to_vmem [thread:$0]  %s684_s3, 1024, %s27_s25, [#allocation3], %s556_s11, %s556_s11, %s557_s12  }
  0x13   :  { %s558_s15 = smov [#allocation5]   ;;  %s505_s19 = scalar_lea.hbm %s686_s5, 1024 }
  0x14   :  { %s40_s16 = sshll.u32 %s558_s15, 4  ;;  %p506_p8 = scmp.ne.s32.totalorder %s686_s5, %s505_s19  ;;  %s41_s16 = int_to_ptr.vmem [resolvable:$true] %s40_s16 }
  0x15   :  { %p509_p9 = scmp.lt.u32.totalorder %s505_s19, %s686_s5 }
  0x17   :  { %p511_p10 = pnand %p509_p9, %p506_p8 }
  0x19   :  { %514 = shalt.err (!%p511_p10)
}
  0x1a   :  { %s515_s24 = scalar_lea.vmem %s41_s16, 1024  ;;  %p520_p12 = scmp.lt.s32.totalorder %s41_s16, %s41_s16 }
  0x1b   :  { %p516_p11 = scmp.ne.s32.totalorder %s41_s16, %s515_s24  ;;  %p521_p13 = scmp.lt.s32.totalorder %s515_s24, %s515_s24 }
  0x1d   :  { %p522_p0 = por %p521_p13, %p520_p12 }
  0x1f   :  { %p523_p1 = pnand %p522_p0, %p516_p11 }
  0x21   :  { %526 = shalt.err (!%p523_p1)
}
  0x22   :  { %46 = dma.hbm_to_vmem [thread:$0]  %s686_s5, 1024, %s41_s16, [#allocation6], %s556_s11, %s556_s11, %s557_s12  }
  0x23   :  { %549 = dma.done.wait [#allocation3], 1024  }
  0x24   :  { %550 = vsyncadd [#allocation3], 4294966272 }
  0x25   :  { %551 = dma.done.wait [#allocation6], 1024  }
  0x26   :  { %552 = vsyncadd [#allocation6], 4294966272  ;;  %v559_v0 = vmov 0.0   ;;  %vm560_vm0 = vmmov 0   ;;  %vm71_vm1 = vcmask 1043456   ;;  %v56_v2 = vld [vmem:[%s681_s0] sm:$0xff] }
  0x27   :  { %408 = vmatprep.subr.bf16.mxu0 %v559_v0  ;;  %410 = vmatprep.mubr.msk.bf16.mxu0 %vm560_vm0, %v559_v0  ;;  %v59_v1 = vld [vmem:[%s682_s1] sm:$0xf]  ;;  %v57_v3 = vld [vmem:[%s681_s0 + $0x8] sm:$0xff]  ;;  %vm67_vm2 = vcmask 64512   ;;  %v465_v8 = vld [vmem:[#allocation2 + $0x10] sm:$0xff]  }
  0x28   :  { %414 = vmatprep.subr.bf16.mxu1 %v559_v0  ;;  %430 = vmatprep.mubr.msk.bf16.mxu1 %vm560_vm0, %v559_v0  ;;  %v73_v4 = vsel %vm71_vm1, %v59_v1, 0  ;;  %v58_v5 = vpack.c.bf16 %v57_v3, %v56_v2  ;;  %v463_v6 = vld [vmem:[#allocation2] sm:$0xff]   ;;  %v464_v7 = vld [vmem:[#allocation2 + $0x8] sm:$0xff]   ;;  %v466_v9 = vld [vmem:[#allocation2 + $0x18] sm:$0xff]  }
  0x29   :  { %409 = vmatpush3.bf16.msra.mxu0 %v73_v4  ;;  %415 = vmatpush3.bf16.msra.mxu1 %v463_v6  ;;  %v467_v10 = vld [vmem:[#allocation2 + $0x20] sm:$0xff]   ;;  %v468_v11 = vld [vmem:[#allocation2 + $0x28] sm:$0xff]   ;;  %v469_v12 = vld [vmem:[#allocation2 + $0x30] sm:$0xff]  }
  0x2a   :  { %434 = vmatprep.subr.bf16.mxu0 %v559_v0  ;;  %416 = vmatprep.subr.bf16.mxu1 %v559_v0  ;;  %v470_v13 = vld [vmem:[#allocation2 + $0x38] sm:$0xff]   ;;  %v471_v14 = vld [vmem:[#allocation5] sm:$0xff]   ;;  %v472_v15 = vld [vmem:[#allocation5 + $0x8] sm:$0xff]  }
  0x2b   :  { %v473_v16 = vld [vmem:[#allocation5 + $0x10] sm:$0xff]   ;;  %v474_v17 = vld [vmem:[#allocation5 + $0x18] sm:$0xff]   ;;  %v475_v18 = vld [vmem:[#allocation5 + $0x20] sm:$0xff]  }
  0x2c   :  { %411 = vmatmul.mubr.msk.bf16.vlgmr.msra.gmra.mrb[0].mxu0 %vm67_vm2, %v58_v5  ;;  %v476_v19 = vld [vmem:[#allocation5 + $0x28] sm:$0xff]   ;;  %v368_v20 = vld [vmem:[%s683_s2] ss:$0 sm:$0xff]  ;;  %v477_v30 = vld [vmem:[#allocation5 + $0x30] sm:$0xff]  }
  0x2d   :  { %450 = vmatprep.mubr.msk.bf16.mxu0 %vm560_vm0, %v559_v0  ;;  %417 = vmatpush3.bf16.msra.mxu1 %v464_v7  ;;  %v478_v31 = vld [vmem:[#allocation5 + $0x38] sm:$0xff]   ;;  %v370_v32 = vld [vmem:[%s685_s4] ss:$0 sm:$0xff]  ;;  %s561_s4 = smov [#allocation7]  }
  0x2e   :  { %418 = vmatprep.subr.bf16.mxu1 %v559_v0  ;;  %435 = vmatpush3.bf16.msra.mxu0 %v471_v14  ;;  %v379_v42 = vld [vmem:[%s687_s6] ss:$0 sm:$0xff]  ;;  %s355_s11 = sshll.u32 %s561_s4, 4  ;;  %s356_s11 = int_to_ptr.vmem [resolvable:$true] %s355_s11 }
  0x2f   :  { %436 = vmatprep.subr.bf16.mxu0 %v559_v0  ;;  %s527_s12 = scalar_lea.vmem %s356_s11, 256  ;;  %p532_p3 = scmp.lt.s32.totalorder %s356_s11, %s356_s11 }
  0x30   :  { %p528_p2 = scmp.ne.s32.totalorder %s356_s11, %s527_s12  ;;  %p533_p4 = scmp.lt.s32.totalorder %s527_s12, %s527_s12 }
  0x31   :  { %419 = vmatpush3.bf16.msra.mxu1 %v465_v8 }
  0x32   :  { %420 = vmatprep.subr.bf16.mxu1 %v559_v0  ;;  %437 = vmatpush3.bf16.msra.mxu0 %v472_v15  ;;  %p534_p5 = por %p533_p4, %p532_p3 }
  0x33   :  { %438 = vmatprep.subr.bf16.mxu0 %v559_v0 }
  0x34   :  { %p535_p6 = pnand %p534_p5, %p528_p2 }
  0x35   :  { %421 = vmatpush3.bf16.msra.mxu1 %v466_v9 }
  0x36   :  { %422 = vmatprep.subr.bf16.mxu1 %v559_v0  ;;  %439 = vmatpush3.bf16.msra.mxu0 %v473_v16 }
  0x37   :  { %440 = vmatprep.subr.bf16.mxu0 %v559_v0 }
  0x39   :  { %423 = vmatpush3.bf16.msra.mxu1 %v467_v10 }
  0x3a   :  { %424 = vmatprep.subr.bf16.mxu1 %v559_v0  ;;  %441 = vmatpush3.bf16.msra.mxu0 %v474_v17 }
  0x3b   :  { %442 = vmatprep.subr.bf16.mxu0 %v559_v0 }
  0x3d   :  { %425 = vmatpush3.bf16.msra.mxu1 %v468_v11 }
  0x3e   :  { %426 = vmatprep.subr.bf16.mxu1 %v559_v0  ;;  %443 = vmatpush3.bf16.msra.mxu0 %v475_v18 }
  0x3f   :  { %444 = vmatprep.subr.bf16.mxu0 %v559_v0 }
  0x41   :  { %427 = vmatpush3.bf16.msra.mxu1 %v469_v12 }
  0x42   :  { %428 = vmatprep.subr.bf16.mxu1 %v559_v0  ;;  %445 = vmatpush3.bf16.msra.mxu0 %v476_v19 }
  0x43   :  { %446 = vmatprep.subr.bf16.mxu0 %v559_v0 }
  0x45   :  { %429 = vmatpush3.bf16.msra.mxu1 %v470_v13 }
  0x46   :  { %447 = vmatpush3.bf16.msra.mxu0 %v477_v30 }
  0x47   :  { %448 = vmatprep.subr.bf16.mxu0 %v559_v0 }
  0x4a   :  { %449 = vmatpush3.bf16.msra.mxu0 %v478_v31 }
  0xff   :  { %v109_v21 = vpop.f32.mrb[0].mxu0 }
 0x100   :  { %v110_v22 = vadd.f32 %v368_v20, %v109_v21  ;;  %v412_v23 = vpop.f32.mrb[1].mxu0 }
 0x101   :  { %v112_v24 = vpop.f32.mrb[2].mxu0 }
 0x102   :  { %v113_v25 = vadd.f32 %v368_v20, %v112_v24  ;;  %v413_v26 = vpop.f32.mrb[3].mxu0  ;;  %v116_v27 = vmax.f32 %v110_v22, 0.0 }
 0x104   :  { %v117_v28 = vmax.f32 %v113_v25, 0.0 }
 0x106   :  { %v118_v29 = vpack.c.bf16 %v117_v28, %v116_v27 }
 0x108   :  { %431 = vmatmul.mubr.bf16.vlgmr.msra.gmra.mrb[0].mxu1 %v118_v29 }
 0x1db   :  { %v224_v33 = vpop.f32.mrb[0].mxu1 }
 0x1dc   :  { %v225_v34 = vadd.f32 %v370_v32, %v224_v33  ;;  %v432_v35 = vpop.f32.mrb[1].mxu1 }
 0x1dd   :  { %v227_v36 = vpop.f32.mrb[2].mxu1 }
 0x1de   :  { %v228_v37 = vadd.f32 %v370_v32, %v227_v36  ;;  %v433_v38 = vpop.f32.mrb[3].mxu1  ;;  %v231_v39 = vmax.f32 %v225_v34, 0.0 }
 0x1e0   :  { %v232_v40 = vmax.f32 %v228_v37, 0.0 }
 0x1e2   :  { %v233_v41 = vpack.c.bf16 %v232_v40, %v231_v39 }
 0x1e4   :  { %451 = vmatmul.mubr.bf16.vlgmr.msra.gmra.mrb[4].mxu0 %v233_v41 }
 0x2b7   :  { %v339_v43 = vpop.f32.mrb[4].mxu0 }
 0x2b8   :  { %v340_v44 = vadd.f32 %v379_v42, %v339_v43  ;;  %v452_v45 = vpop.f32.mrb[5].mxu0 }
 0x2b9   :  { %v342_v46 = vpop.f32.mrb[6].mxu0 }
 0x2ba   :  { %479 = vtanh.f32 %v340_v44  ;;  %v343_v47 = vadd.f32 %v379_v42, %v342_v46  ;;  %v453_v48 = vpop.f32.mrb[7].mxu0 }
 0x2bc   :  { %481 = vtanh.f32 %v343_v47 }
 0x2c4   :  { %v480_v49 = vpop.eup %479 }
 0x2c5   :  { %348 = vst [vmem:[#allocation7] sm:$0xff] %v480_v49 }
 0x2c6   :  { %v482_v50 = vpop.eup %481 }
 0x2c7   :  { %349 = vst [vmem:[#allocation7 + $0x8] sm:$0xff] %v482_v50 }
 0x2c8   :  { %538 = shalt.err (!%p535_p6)
}
 0x2c9   :  { %s539_s14 = scalar_lea.hbm %s688_s7, 256 }
 0x2ca   :  { %p540_p7 = scmp.ne.s32.totalorder %s688_s7, %s539_s14  ;;  %p543_p8 = scmp.lt.u32.totalorder %s539_s14, %s688_s7 }
 0x2cc   :  { %p545_p9 = pnand %p543_p8, %p540_p7 }
 0x2ce   :  { %548 = shalt.err (!%p545_p9)
}
 0x2cf   :  { %s562_s19 = smov 128   ;;  %s563_s20 = smov 8  }
 0x2d0   :  { %361 = dma.vmem_to_hbm [thread:$0]  %s356_s11, 256, %s688_s7, [#allocation4], %s562_s19, %s562_s19, %s563_s20  }
 0x2d1   :  { %553 = dma.done.wait [#allocation4], 256  }
 0x2d2   :  { %554 = vsyncadd [#allocation4], 4294967040 }
 0x2d3   :  { %365 = vsyncpa [#allocation3], 1 }
 0x2d4   :  { %366 = vsyncpa [#allocation6], 1 }
 0x2d5   :  { %367 = vsyncpa [#allocation4], 1 }

</bundles_post_ra>
